<compile_context>
chip_gen: v7x
topology: tpu7x:2x2x1
jax: 0.10.0
libtpu: 0.0.40
codegen_flags: <defaults>
</compile_context>

<pallas_src>
import math
from functools import partial

import jax
import jax.numpy as jnp
from jax.experimental import pallas as pl
from jax.experimental.pallas import tpu as pltpu

_NEG_INF = -1e30  # Python float literal -> lowered as an immediate, never captured.


def _pick_tile(dim, prefs):
    """Largest preferred tile that divides `dim`, else the full dim."""
    for t in prefs:
        if dim % t == 0:
            return t
    return dim


def _modern_tpu():
    """True on v6e/v7x-class chips (bf16 VPU/EUP); False on v5e/older/CPU-interpret."""
    try:
        kind = jax.devices()[0].device_kind.lower()
    except Exception:
        return False
    return ("v6" in kind) or ("v7" in kind) or ("7x" in kind)


# --------------------------------------------------------------------------
# 1) QKV projection: (B,T,C) @ (3H,C,hd) + (3H,1,hd) -> (B, 3H, T, hd)
# --------------------------------------------------------------------------
def _qkv_proj_kernel(x_ref, w_ref, b_ref, o_ref):
    acc = jnp.dot(x_ref[...], w_ref[...], preferred_element_type=jnp.float32)
    o_ref[...] = (acc + b_ref[...]).astype(o_ref.dtype)


def qkv_projection(x, w_heads, b_heads, *, n_head, head_dim, tm=None):
    B, T, C = x.shape
    tm = tm or _pick_tile(T, (1024, 512, 256, 128, 64, 32, 16, 8))
    n_cols = 3 * n_head
    return pl.pallas_call(
        _qkv_proj_kernel,
        out_shape=jax.ShapeDtypeStruct((B, n_cols, T, head_dim), jnp.bfloat16),
        grid_spec=pltpu.PrefetchScalarGridSpec(
            num_scalar_prefetch=0,
            grid=(B, T // tm, n_cols),
            in_specs=[
                # x block index is independent of n (innermost axis) -> fetched once.
                pl.BlockSpec((None, tm, C), lambda b, i, n: (b, i, 0)),
                pl.BlockSpec((None, C, head_dim), lambda b, i, n: (n, 0, 0)),
                pl.BlockSpec((None, 1, head_dim), lambda b, i, n: (n, 0, 0)),
            ],
            out_specs=pl.BlockSpec((None, None, tm, head_dim),
                                   lambda b, i, n: (b, n, i, 0)),
        ),
        compiler_params=pltpu.CompilerParams(
            dimension_semantics=("parallel", "parallel", "arbitrary")),
    )(x, w_heads, b_heads)


# --------------------------------------------------------------------------
# 2) Flash-attention core: grid = (B, H, T//tq, T//tkv), online softmax.
# --------------------------------------------------------------------------
def _flash_kernel(q_ref, k_ref, v_ref, o_ref, m_sc, l_sc, acc_sc, *,
                  tq, tkv, bf16_exp):
    qi = pl.program_id(2)
    ki = pl.program_id(3)
    nk = pl.num_programs(3)

    q_lo = qi * tq
    q_hi = qi * tq + (tq - 1)
    k_lo = ki * tkv
    k_hi = ki * tkv + (tkv - 1)

    @pl.when(ki == 0)
    def _():
        m_sc[...] = jnp.full_like(m_sc, _NEG_INF)
        l_sc[...] = jnp.zeros_like(l_sc)
        acc_sc[...] = jnp.zeros_like(acc_sc)

    def scores():
        # Q already carries the 1/sqrt(hd) scale (folded into W_q / b_q).
        # Contract head dims of Q and K directly (no K transpose relayout).
        return jax.lax.dot_general(
            q_ref[...], k_ref[...],
            dimension_numbers=(((1,), (1,)), ((), ())),
            preferred_element_type=jnp.float32)

    def online_update(s):
        m_prev = m_sc[...]
        m_new = jnp.maximum(m_prev, jnp.max(s, axis=-1, keepdims=True))
        alpha = jnp.exp(m_prev - m_new)
        if bf16_exp:
            # bf16 EUP/VPU path (v6e/v7x): exp over the tq*tkv tile in bf16,
            # m/l bookkeeping stays f32.
            p = jnp.exp((s - m_new).astype(jnp.bfloat16))
            p_sum = jnp.sum(p.astype(jnp.float32), axis=-1, keepdims=True)
        else:
            p = jnp.exp(s - m_new)
            p_sum = jnp.sum(p, axis=-1, keepdims=True)
        l_sc[...] = alpha * l_sc[...] + p_sum
        acc_sc[...] = alpha * acc_sc[...] + jnp.dot(
            p.astype(v_ref.dtype), v_ref[...],
            preferred_element_type=jnp.float32)
        m_sc[...] = m_new

    # Fully-unmasked KV tile (strictly below the diagonal band): no select needed.
    @pl.when(k_hi <= q_lo)
    def _():
        online_update(scores())

    # Diagonal (straddling) tile: apply the causal mask.
    @pl.when(jnp.logical_and(k_lo <= q_hi, k_hi > q_lo))
    def _():
        s = scores()
        row = jax.lax.broadcasted_iota(jnp.int32, (tq, tkv), 0) + q_lo
        col = jax.lax.broadcasted_iota(jnp.int32, (tq, tkv), 1) + k_lo
        online_update(jnp.where(col <= row, s, _NEG_INF))

    # KV tiles entirely above the diagonal are skipped (and their DMA is deduped
    # away by the clamped index_map).

    @pl.when(ki == nk - 1)
    def _():
        inv_l = pl.reciprocal(l_sc[...], approx=True)
        o_ref[...] = (acc_sc[...] * inv_l).astype(o_ref.dtype)


def flash_attention(qkv, *, n_head, tq=None, tkv=None, bf16_exp=False):
    """qkv: (B, 3H, T, hd) bf16, head-major [Q heads | K heads | V heads] on axis 1."""
    B, n_cols, T, hd = qkv.shape
    assert n_cols == 3 * n_head
    H = n_head
    if tq is None or tkv is None:
        if _modern_tpu():
            tq = tq or _pick_tile(T, (256, 128))
            tkv = tkv or _pick_tile(T, (512, 256, 128))
        else:
            # v5e: 128-native MXU, 1 vst slot -> keep tiles small.
            tq = tq or _pick_tile(T, (128,))
            tkv = tkv or _pick_tile(T, (256, 128))
    nq, nk = T // tq, T // tkv

    def q_map(b, h, i, j):
        return (b, h, i, 0)

    def kv_map(offset):
        def _map(b, h, i, j):
            # Clamp to the diagonal block: above-diagonal kv steps reuse the
            # already-resident block, so no DMA is issued for skipped tiles.
            j_max = (i * tq + (tq - 1)) // tkv
            return (b, offset + h, jnp.minimum(j, j_max), 0)
        return _map

    kernel = partial(_flash_kernel, tq=tq, tkv=tkv, bf16_exp=bf16_exp)
    return pl.pallas_call(
        kernel,
        out_shape=jax.ShapeDtypeStruct((B, H, T, hd), qkv.dtype),
        grid_spec=pltpu.PrefetchScalarGridSpec(
            num_scalar_prefetch=0,
            grid=(B, H, nq, nk),
            in_specs=[
                pl.BlockSpec((None, None, tq, hd), q_map),
                pl.BlockSpec((None, None, tkv, hd), kv_map(H)),
                pl.BlockSpec((None, None, tkv, hd), kv_map(2 * H)),
            ],
            out_specs=pl.BlockSpec((None, None, tq, hd), q_map),
            scratch_shapes=[
                pltpu.VMEM((tq, 1), jnp.float32),    # running max m
                pltpu.VMEM((tq, 1), jnp.float32),    # running sum l
                pltpu.VMEM((tq, hd), jnp.float32),   # output accumulator
            ],
        ),
        compiler_params=pltpu.CompilerParams(
            dimension_semantics=("parallel", "parallel", "parallel", "arbitrary")),
    )(qkv, qkv, qkv)


# --------------------------------------------------------------------------
# 3) Output projection with merge-heads fused: (B,H,T,hd) x (H,hd,C) -> (B,T,C)
# --------------------------------------------------------------------------
def _out_proj_kernel(y_ref, w_ref, b_ref, o_ref, acc_ref):
    h = pl.program_id(3)

    @pl.when(h == 0)
    def _():
        acc_ref[...] = jnp.zeros_like(acc_ref)

    acc_ref[...] += jnp.dot(y_ref[...], w_ref[...],
                            preferred_element_type=jnp.float32)

    @pl.when(h == pl.num_programs(3) - 1)
    def _():
        o_ref[...] = (acc_ref[...] + b_ref[...]).astype(o_ref.dtype)


def output_projection(y, w_heads, bias, *, out_dtype, tm=None, tn=None):
    """y: (B,H,T,hd) bf16; w_heads: (H,hd,C) bf16; bias: (1,C) f32 -> (B,T,C)."""
    B, H, T, hd = y.shape
    C = w_heads.shape[-1]
    tm = tm or _pick_tile(T, (512, 256, 128, 64, 32, 16, 8))
    tn = tn or _pick_tile(C, (512, 256, 128))
    return pl.pallas_call(
        _out_proj_kernel,
        out_shape=jax.ShapeDtypeStruct((B, T, C), out_dtype),
        grid_spec=pltpu.PrefetchScalarGridSpec(
            num_scalar_prefetch=0,
            grid=(B, T // tm, C // tn, H),
            in_specs=[
                # Reads the flash output in its native layout: the merge-heads
                # transpose is absorbed by this index_map (head axis = reduction).
                pl.BlockSpec((None, None, tm, hd), lambda b, i, j, h: (b, h, i, 0)),
                pl.BlockSpec((None, hd, tn), lambda b, i, j, h: (h, 0, j)),
                pl.BlockSpec((1, tn), lambda b, i, j, h: (0, j)),
            ],
            out_specs=pl.BlockSpec((None, tm, tn), lambda b, i, j, h: (b, i, j)),
            scratch_shapes=[pltpu.VMEM((tm, tn), jnp.float32)],
        ),
        compiler_params=pltpu.CompilerParams(
            dimension_semantics=("parallel", "parallel", "parallel", "arbitrary")),
    )(y, w_heads, bias)


# --------------------------------------------------------------------------
# Full CausalSelfAttention forward
# --------------------------------------------------------------------------
def causal_self_attention(x, w_attn, b_attn, w_proj, b_proj, *, n_head):
    B, T, C = x.shape
    assert C % n_head == 0
    hd = C // n_head
    scale = 1.0 / math.sqrt(hd)
    modern = _modern_tpu()

    # ---- trace-time weight prep (a one-time cost for real training loops) ----
    # (C, 3C) -> (3H, C, hd) per-(tensor, head) column blocks; fold the softmax
    # 1/sqrt(hd) scale into the Q blocks so the flash kernel never multiplies.
    w_heads = jnp.transpose(w_attn.reshape(C, 3 * n_head, hd), (1, 0, 2))
    b_heads = b_attn.reshape(3 * n_head, 1, hd)
    qscale = jnp.concatenate(
        [jnp.full((n_head, 1, 1), scale, jnp.float32),
         jnp.ones((2 * n_head, 1, 1), jnp.float32)], axis=0)
    w_heads = (w_heads * qscale).astype(jnp.bfloat16)
    b_heads = (b_heads * qscale).astype(jnp.float32)
    w_proj_heads = w_proj.reshape(n_head, hd, C).astype(jnp.bfloat16)
    b_proj_f32 = b_proj.astype(jnp.float32)

    xb = x.astype(jnp.bfloat16)

    # 1) QKV projection, emitted directly in (B, 3H, T, hd) head-major layout.
    qkv = qkv_projection(xb, w_heads, b_heads, n_head=n_head, head_dim=hd)

    # 2) Flash attention core (reads Q/K/V blocks straight out of qkv).
    y = flash_attention(qkv, n_head=n_head, bf16_exp=modern)     # (B, H, T, hd)

    # 3) Output projection with merge-heads fused into the BlockSpecs.
    return output_projection(y, w_proj_heads, b_proj_f32, out_dtype=x.dtype)


# --------------------------------------------------------------------------
# Pure-JAX reference mirroring the PyTorch forward pass (f32 throughout)
# --------------------------------------------------------------------------
def reference_attention(x, w_attn, b_attn, w_proj, b_proj, *, n_head):
    B, T, C = x.shape
    hd = C // n_head
    qkv = x @ w_attn + b_attn
    q, k, v = jnp.split(qkv, 3, axis=-1)
    q = q.reshape(B, T, n_head, hd).transpose(0, 2, 1, 3)
    k = k.reshape(B, T, n_head, hd).transpose(0, 2, 1, 3)
    v = v.reshape(B, T, n_head, hd).transpose(0, 2, 1, 3)
    s = jnp.einsum('bhtd,bhsd->bhts', q, k) / math.sqrt(hd)
    mask = jnp.tril(jnp.ones((T, T), dtype=bool))
    s = jnp.where(mask, s, -jnp.inf)
    p = jax.nn.softmax(s, axis=-1)
    y = jnp.einsum('bhts,bhsd->bhtd', p, v)
    y = y.transpose(0, 2, 1, 3).reshape(B, T, C)
    return y @ w_proj + b_proj


if __name__ == "__main__":
    # Small config consistent with the module (block_size >= T).
    B, T, C, n_head = 2, 8, 32, 4

    key = jax.random.PRNGKey(0)
    kx, kwa, kba, kwp, kbp = jax.random.split(key, 5)

    x = jax.random.normal(kx, (B, T, C), dtype=jnp.float32)
    # Deterministic synthetic parameters (GPT-style 0.02-std init).
    w_attn = 0.02 * jax.random.normal(kwa, (C, 3 * C), dtype=jnp.float32)
    b_attn = 0.02 * jax.random.normal(kba, (1, 3 * C), dtype=jnp.float32)
    w_proj = 0.02 * jax.random.normal(kwp, (C, C), dtype=jnp.float32)
    b_proj = 0.02 * jax.random.normal(kbp, (1, C), dtype=jnp.float32)

    out = causal_self_attention(x, w_attn, b_attn, w_proj, b_proj, n_head=n_head)
    out = jax.block_until_ready(out)

    ref = reference_attention(x, w_attn, b_attn, w_proj, b_proj, n_head=n_head)
    assert out.shape == (B, T, C)
    err = float(jnp.max(jnp.abs(out - ref)))
    # Tolerance accounts for bf16 MXU operands + approx reciprocal (accumulation is f32).
    assert jnp.allclose(out, ref, atol=1e-2, rtol=1e-2), f"mismatch vs reference: {err}"

    print("KERNEL_OK")
</pallas_src>

<mosaic_0001>
module attributes {stable_mosaic.version = 11 : i64} {
  func.func @_qkv_proj_kernel(%arg0: i32, %arg1: i32, %arg2: i32, %arg3: memref<1x8x32xbf16, #tpu.memory_space<vmem>>, %arg4: memref<1x32x8xbf16, #tpu.memory_space<vmem>>, %arg5: memref<1x1x8xf32, #tpu.memory_space<vmem>>, %arg6: memref<1x1x8x8xbf16, #tpu.memory_space<vmem>>) attributes {dimension_semantics = [#tpu.dimension_semantics<parallel>, #tpu.dimension_semantics<parallel>, #tpu.dimension_semantics<arbitrary>], iteration_bounds = array<i64: 2, 1, 12>, scalar_prefetch = 0 : i64, scratch_operands = 0 : i64, tpu.core_type = #tpu.core_type<tc>, window_params = [{transform_indices = @transform_0, window_bounds = array<i64: 1, 8, 32>}, {transform_indices = @transform_1, window_bounds = array<i64: 1, 32, 8>}, {transform_indices = @transform_2, window_bounds = array<i64: 1, 1, 8>}, {transform_indices = @transform_3, window_bounds = array<i64: 1, 1, 8, 8>}]} {
    %c0 = arith.constant 0 : index
    %c0_0 = arith.constant 0 : index
    %c0_1 = arith.constant 0 : index
    %0 = vector.load %arg3[%c0, %c0_0, %c0_1] : memref<1x8x32xbf16, #tpu.memory_space<vmem>>, vector<1x8x32xbf16>
    %1 = vector.shape_cast %0 : vector<1x8x32xbf16> to vector<8x32xbf16>
    %c0_2 = arith.constant 0 : index
    %c0_3 = arith.constant 0 : index
    %c0_4 = arith.constant 0 : index
    %2 = vector.load %arg4[%c0_2, %c0_3, %c0_4] : memref<1x32x8xbf16, #tpu.memory_space<vmem>>, vector<1x32x8xbf16>
    %3 = vector.shape_cast %2 : vector<1x32x8xbf16> to vector<32x8xbf16>
    %cst = arith.constant dense<0.000000e+00> : vector<8x8xf32>
    %4 = tpu.matmul %1, %3, %cst {dimension_numbers = #tpu.dot_dimension_numbers<[1], [0], [0], [1], [0, 0, 1, 1], [], []>} : vector<8x32xbf16>, vector<32x8xbf16>, vector<8x8xf32> -> vector<8x8xf32>
    %c0_5 = arith.constant 0 : index
    %c0_6 = arith.constant 0 : index
    %c0_7 = arith.constant 0 : index
    %5 = vector.load %arg5[%c0_5, %c0_6, %c0_7] : memref<1x1x8xf32, #tpu.memory_space<vmem>>, vector<1x1x8xf32>
    %6 = vector.shape_cast %5 : vector<1x1x8xf32> to vector<1x8xf32>
    %7 = vector.broadcast %6 : vector<1x8xf32> to vector<8x8xf32>
    %8 = arith.addf %4, %7 : vector<8x8xf32>
    %9 = arith.truncf %8 : vector<8x8xf32> to vector<8x8xbf16>
    %c0_8 = arith.constant 0 : index
    %c0_9 = arith.constant 0 : index
    %c0_10 = arith.constant 0 : index
    %c0_11 = arith.constant 0 : index
    %10 = vector.load %arg6[%c0_8, %c0_9, %c0_10, %c0_11] : memref<1x1x8x8xbf16, #tpu.memory_space<vmem>>, vector<1x1x8x8xbf16>
    %11 = vector.shape_cast %10 : vector<1x1x8x8xbf16> to vector<8x8xbf16>
    %12 = vector.shape_cast %9 : vector<8x8xbf16> to vector<1x1x8x8xbf16>
    tpu.vector_store %arg6[%c0_8, %c0_9, %c0_10, %c0_11], %12 {strides = array<i32>} : memref<1x1x8x8xbf16, #tpu.memory_space<vmem>>, vector<1x1x8x8xbf16>,
    return
  }
  func.func @transform_0(%arg0: i32, %arg1: i32, %arg2: i32) -> (i32, i32, i32) {
    %c0_i32 = arith.constant 0 : i32
    %c0_i32_0 = arith.constant 0 : i32
    return %arg0, %arg1, %c0_i32 : i32, i32, i32
  }
  func.func @transform_1(%arg0: i32, %arg1: i32, %arg2: i32) -> (i32, i32, i32) {
    %c0_i32 = arith.constant 0 : i32
    %c0_i32_0 = arith.constant 0 : i32
    %c0_i32_1 = arith.constant 0 : i32
    return %arg2, %c0_i32, %c0_i32_0 : i32, i32, i32
  }
  func.func @transform_2(%arg0: i32, %arg1: i32, %arg2: i32) -> (i32, i32, i32) {
    %c0_i32 = arith.constant 0 : i32
    %c0_i32_0 = arith.constant 0 : i32
    %c0_i32_1 = arith.constant 0 : i32
    return %arg2, %c0_i32, %c0_i32_0 : i32, i32, i32
  }
  func.func @transform_3(%arg0: i32, %arg1: i32, %arg2: i32) -> (i32, i32, i32, i32) {
    %c0_i32 = arith.constant 0 : i32
    %c0_i32_0 = arith.constant 0 : i32
    return %arg0, %arg2, %arg1, %c0_i32 : i32, i32, i32, i32
  }
}

</mosaic_0001>

<bundles_post_ra>
// kernel: tpu_custom_call.1
= control target key start
LH: loop header
LB: loop body
LE: loop exit
PB: predicated region body
PF: predicated region fallthrough
CT: control target
= control target key end

     0   :  { %s571_s12 = smov 0   ;;  %s573_s13 = smov 0   ;;  %s628_s0 = inlined_call_operand.vmem [shape: bf16[2,8,32], index: 0, kind: input, shape index: {}]   ;;  %s629_s1 = inlined_call_operand.vmem [shape: bf16[12,32,8], index: 1, kind: input, shape index: {}]   ;;  %s630_s2 = inlined_call_operand.vmem [shape: f32[12,1,8], index: 2, kind: input, shape index: {}]   ;;  %s631_s3 = inlined_call_operand.vmem [shape: bf16[2,12,8,8], index: 3, kind: output, shape index: {}]  }
   0x1   :  { %s575_s14 = smov 0   ;;  %s577_s15 = smov 0  }
   0x2   :  { %s579_s16 = smov 0  }
   0x3 LB: > { %s25_s17 = sadd.s32 1, %s539_s14  ;;  %s32_s18 = sadd.s32 1, %s543_s15  ;;  %s547_s16 = sphi %s579_s16, %s13_s16   ;;  %s543_s15 = sphi %s577_s15, %s635_s15   ;;  %s539_s14 = sphi %s575_s14, %s634_s14   ;;  %s535_s13 = sphi %s573_s13, %s633_s13   ;;  %s531_s12 = sphi %s571_s12, %s632_s12  }
   0x4   : > { %p26_p0 = scmp.ge.s32.totalorder %s25_s17, 12  ;;  %p441_p1 = scmp.ge.s32.totalorder %s547_s16, 1 }
   0x5   : > { %p182_p2 = scmp.lt.s32.totalorder %s547_s16, 25 }
   0x6   : > { %s637_s17 = smov (%p26_p0, %s25_s17), 0  ;;  %s639_s18 = smov (!%p26_p0, %s32_s18), %s543_s15 }
   0x7   : > { %p183_p3 = pnand %p441_p1, %p182_p2  ;;  %p34_p4 = scmp.ge.s32.totalorder %s639_s18, 2 }
   0x8   : > { %p229_p5 = scmp.lt.s32.totalorder (!%p183_p3), %s531_s12, 11  ;;  %p222_p6 = scmp.lt.s32.totalorder (!%p183_p3), %s535_s13, 1  ;;  %v549_v0 = vmov (!%p183_p3), 0.0   ;;  %vm550_vm0 = vmmov (!%p183_p3), 0   ;;  %vm273_vm1 = vcmask (!%p183_p3), 261120   ;;  %vm318_vm2 = vcmask (!%p183_p3), 60416  }
   0x9   : > { %s641_s18 = smov (%p34_p4, %s639_s18), 0  ;;  %186 = sbr.rel (%p183_p3) target bundleno = 244 (0xf4), region = 32 }
   0xa   : > { %456 = vmatprep.subr.bf16.mxu0 (!%p183_p3), %v549_v0  ;;  %460 = vmatprep.mubr.msk.bf16.mxu0 (!%p183_p3), %vm550_vm0, %v549_v0 }
  0x10   : > { %s643_s12 = smov (!%p229_p5, %s531_s12), 11  ;;  %s645_s13 = smov (!%p222_p6, %s535_s13), 1 }
  0x11   : > { %s452_s19 = sshll.u32 %s643_s12, 4  ;;  %s442_s23 = sshll.u32 %s645_s13, 2 }
  0x12   : > { %s233_s22 = scalar_lea.vmem %s629_s1, %s452_s19  ;;  %s464_s24 = smul.u32 12, %s645_s13 }
  0x13   : > { %v507_v1 = vld [vmem:[%s233_s22] sm:$0xff]   ;;  %v508_v2 = vld [vmem:[%s233_s22 + $0x8] sm:$0xff]   ;;  %s228_s28 = scalar_lea.vmem %s628_s0, %s442_s23  ;;  %s236_s4 = scalar_lea.vmem %s630_s2, %s643_s12 }
  0x14   : > { %457 = vmatpush3.bf16.msra.mxu0 %v507_v1  ;;  %s245_s25 = sadd.s32 %s464_s24, %s643_s12  ;;  %v249_v3 = vld [vmem:[%s228_s28] sm:$0xf] }
  0x15   : > { %458 = vmatprep.subr.bf16.mxu0 %v549_v0  ;;  %v446_v4 = vld [vmem:[%s236_s4] ss:$0 sm:$0xff]  ;;  %s445_s5 = sshll.u32 %s245_s25, 2 }
  0x16   : > { %s247_s8 = scalar_lea.vmem %s631_s3, %s445_s5 }
  0x18   : > { %459 = vmatpush3.bf16.msra.mxu0 %v508_v2 }
  0x1b   : > { %461 = vmatmul.mubr.msk.bf16.vlgmr.msra.gmra.mrb[0].mxu0 %vm273_vm1, %v249_v3 }
  0xee   : > { %v311_v5 = vpop.f32.mrb[0].mxu0 }
  0xef   : > { %v312_v6 = vadd.f32 %v446_v4, %v311_v5  ;;  %v462_v7 = vpop.f32.mrb[1].mxu0 }
  0xf0   : > { %v314_v8 = vpop.f32.mrb[2].mxu0 }
  0xf1   : > { %v317_v9 = vpack.c.bf16 %v312_v6, %v312_v6  ;;  %v463_v10 = vpop.f32.mrb[3].mxu0 }
  0xf3   : > { %319 = vst.msk [vmem:[%s247_s8] sm:$0xf] %vm318_vm2, %v317_v9 }
  0xf4 PF: > { %s13_s16 = sadd.s32 1, %s547_s16   ;;  %s632_s12 = smov %s539_s14 }
  0xf5   : > { %p10_p7 = scmp.ge.s32.totalorder %s13_s16, 26   ;;  %s633_s13 = smov %s543_s15 }
  0xf6   : > { %s634_s14 = smov %s637_s17  ;;  %s635_s15 = smov %s641_s18 }
  0xf7   :  { %12 = sbr.rel (!%p10_p7) target bundleno = 3 (0x3), region = 68 }

</bundles_post_ra>
